<compile_context>
chip_gen: v5e
topology: v5e:2x2
jax: 0.10.0
libtpu: 0.0.40
codegen_flags: <defaults>
</compile_context>

<pallas_src>
import jax
import jax.numpy as jnp
from jax.experimental import pallas as pl
from jax.experimental.pallas import tpu as pltpu

_LANES = 128
_SUBLANES = 8
_BLOCK_BYTES = 1 << 20      # ~1 MiB per input block (~85% of HBM roofline)


def _dice_kernel(n_ref, x_ref, t_ref, out_ref, inter_acc, denom_acc):
    """grid = (num_splits, steps); axis 1 is the reduction over row-blocks.

    Blocks are assigned interleaved: global block = i * num_splits + c, so every
    block that can hold invalid data (the ragged tail of the array and the
    duplicated, clamped out-of-range blocks) lands on i == steps - 1 and the
    tail mask only ever runs in that epilogue step.

    inter_acc / denom_acc are (8, 128) f32 vreg-tile accumulators.  The single
    cross-lane reduce + SMEM scalar writes happen once, in the epilogue:
        out_ref[0, 0] = sum(sigmoid(x) * t)        (this core's partial)
        out_ref[0, 1] = sum(sigmoid(x)) + sum(t)   (this core's partial)
    """
    c = pl.program_id(0)
    i = pl.program_id(1)
    num_splits = pl.num_programs(0)
    steps = pl.num_programs(1)
    block_rows = x_ref.shape[0]

    @pl.when(i == 0)
    def _():
        inter_acc[...] = jnp.zeros_like(inter_acc)
        denom_acc[...] = jnp.zeros_like(denom_acc)

    x = x_ref[...].astype(jnp.float32)
    t = t_ref[...].astype(jnp.float32)
    s = 0.5 * jnp.tanh(0.5 * x) + 0.5          # sigmoid, single EUP push
    prod = s * t
    ssum = s + t

    @pl.when(i < steps - 1)
    def _():
        # Bulk steps: blocks are guaranteed fully valid -> no mask work.
        inter_acc[...] += jnp.sum(prod.reshape(-1, _SUBLANES, _LANES), axis=0)
        denom_acc[...] += jnp.sum(ssum.reshape(-1, _SUBLANES, _LANES), axis=0)

    @pl.when(i == steps - 1)
    def _():
        # Epilogue: mask everything past the true element count n.  This zeroes
        # the ragged tail, the garbage rows of a partial edge block, and the
        # whole duplicated (clamped) block of a core that ran out of blocks.
        row0 = (i * num_splits + c) * block_rows         # UNclamped global row
        r = jax.lax.broadcasted_iota(jnp.int32, (block_rows, _LANES), 0)
        l = jax.lax.broadcasted_iota(jnp.int32, (block_rows, _LANES), 1)
        valid = (row0 + r) * _LANES + l < n_ref[0]
        p = jnp.where(valid, prod, 0.0)
        d = jnp.where(valid, ssum, 0.0)
        inter_acc[...] += jnp.sum(p.reshape(-1, _SUBLANES, _LANES), axis=0)
        denom_acc[...] += jnp.sum(d.reshape(-1, _SUBLANES, _LANES), axis=0)
        out_ref[0, 0] = jnp.sum(inter_acc[...])
        out_ref[0, 1] = jnp.sum(denom_acc[...])


def _tensorcores_per_chip():
    """Best-effort TensorCore-per-chip count (v7x: 2, v5e/v6e: 1).

    Unknown fields default to 2: the split stays correct on 1-TC chips (just a
    second tiny partial) and is worth ~2x aggregate HBM bandwidth on v7x.
    """
    try:
        info = pltpu.get_tpu_info()
    except Exception:
        return 2
    for attr in ("num_cores", "core_count", "cores_per_chip", "num_tensorcores"):
        val = getattr(info, attr, None)
        if val is None:
            continue
        try:
            val = int(val)
        except (TypeError, ValueError):
            continue
        if val >= 1:
            return val
    return 2


def _choose_block_rows(rows, itemsize, block_rows_hint):
    """Pick (block_rows, rows_alloc) for `rows` 128-lane rows."""
    sub = max(_SUBLANES, 32 // max(1, itemsize))      # 8 f32 / 16 bf16 / 32 int8
    target = block_rows_hint if block_rows_hint else _BLOCK_BYTES // (_LANES * itemsize)
    target = max(sub, (int(target) // sub) * sub)
    if rows > target:
        return target, rows            # big input: edge block + in-kernel mask
    # Small input: one full-extent block; round rows up to the sublane pack so
    # the in-kernel (-1, 8, 128) reshape stays exactly tile aligned.
    block = pl.cdiv(rows, sub) * sub
    return block, block


def dice_loss(inputs, targets, smooth=1.0, *, block_rows=None):
    """JAX/Pallas equivalent of DiceLoss.forward(inputs, targets, smooth)."""
    x = inputs.reshape(-1)             # native dtype stream (bf16 stays bf16)
    t = targets.reshape(-1)
    n = x.shape[0]

    itemsize = max(x.dtype.itemsize, t.dtype.itemsize)
    rows = pl.cdiv(n, _LANES)
    block, rows_alloc = _choose_block_rows(rows, itemsize, block_rows)

    pad = rows_alloc * _LANES - n
    if pad:
        # Only hit when numel % 128 != 0 (or for tiny inputs rounded up to one
        # sublane pack).  Padded values are masked out in-kernel; the pad just
        # makes the 2-D (rows, 128) reshape legal.
        # TODO(synk): stream the <128-element tail separately to avoid this
        # extra HBM pass for large unaligned inputs.
        x = jnp.pad(x, (0, pad))
        t = jnp.pad(t, (0, pad))
    xp = x.reshape(rows_alloc, _LANES)
    tp = t.reshape(rows_alloc, _LANES)

    total_blocks = pl.cdiv(rows_alloc, block)
    num_splits = max(1, min(2, _tensorcores_per_chip(), total_blocks))
    steps = pl.cdiv(total_blocks, num_splits)

    def in_index(c, i, n_ref):
        # Interleaved assignment; clamp so the (<= num_splits - 1) grid slots
        # past the end re-read the last real block (fully masked in-kernel).
        return (jnp.minimum(i * num_splits + c, total_blocks - 1), 0)

    in_spec = pl.BlockSpec((block, _LANES), in_index)

    vmem_limit = max(
        16 << 20,
        min(64 << 20,
            2 * 2 * block * _LANES * itemsize       # double-buffered input blocks
            + 12 * block * _LANES * 4               # f32 / i32 block temporaries
            + (1 << 20)))

    partials = pl.pallas_call(
        _dice_kernel,
        out_shape=jax.ShapeDtypeStruct((num_splits, 2), jnp.float32),
        grid_spec=pltpu.PrefetchScalarGridSpec(
            num_scalar_prefetch=1,
            grid=(num_splits, steps),
            in_specs=[in_spec, in_spec],
            out_specs=pl.BlockSpec((1, 2), lambda c, i, n_ref: (c, 0),
                                   memory_space=pltpu.SMEM),
            scratch_shapes=[
                pltpu.VMEM((_SUBLANES, _LANES), jnp.float32),
                pltpu.VMEM((_SUBLANES, _LANES), jnp.float32),
            ],
        ),
        compiler_params=pltpu.CompilerParams(
            # TODO(synk): on v7x confirm axis 0 really shards across both
            # TensorCores (may need pltpu.CORE_PARALLEL / pl.core_map); plain
            # "parallel" is a no-op on single-TC chips either way.
            dimension_semantics=("parallel", "arbitrary"),
            vmem_limit_bytes=int(vmem_limit),
        ),
        cost_estimate=pl.CostEstimate(
            flops=6 * n,
            transcendentals=n,
            bytes_accessed=n * (inputs.dtype.itemsize + targets.dtype.itemsize)
            + num_splits * 8,
        ),
    )(jnp.array([n], dtype=jnp.int32), xp, tp)

    inter = jnp.sum(partials[:, 0])
    denom = jnp.sum(partials[:, 1])
    smooth = jnp.float32(smooth)
    dice = (2.0 * inter + smooth) / (denom + smooth)
    return 1.0 - dice


def _dice_loss_ref(inputs, targets, smooth=1.0):
    s = jax.nn.sigmoid(inputs.reshape(-1).astype(jnp.float32))
    t = targets.reshape(-1).astype(jnp.float32)
    inter = jnp.sum(s * t)
    dice = (2.0 * inter + smooth) / (jnp.sum(s) + jnp.sum(t) + smooth)
    return 1.0 - dice


if __name__ == "__main__":
    key = jax.random.PRNGKey(0)
    k1, k2, k3, k4, k5, k6, k7, k8 = jax.random.split(key, 8)

    # 1) Small NCHW logits / binary targets (matches the PyTorch module usage).
    x = jax.random.normal(k1, (2, 4, 16, 16), dtype=jnp.float32)
    tgt = (jax.random.uniform(k2, (2, 4, 16, 16)) > 0.5).astype(jnp.float32)
    loss = dice_loss(x, tgt, smooth=1.0)
    jax.block_until_ready(loss)
    ref = _dice_loss_ref(x, tgt, smooth=1.0)
    assert jnp.allclose(loss, ref, rtol=1e-5, atol=1e-5), (loss, ref)

    # 2) bf16 inputs: native-dtype streaming + in-kernel f32 upcast.
    xb = jax.random.normal(k3, (2, 8, 128, 256), dtype=jnp.bfloat16)
    tb = (jax.random.uniform(k4, (2, 8, 128, 256)) > 0.5).astype(jnp.bfloat16)
    loss_b = dice_loss(xb, tb, smooth=1.0)
    jax.block_until_ready(loss_b)
    ref_b = _dice_loss_ref(xb, tb, smooth=1.0)
    assert jnp.allclose(loss_b, ref_b, rtol=1e-4, atol=1e-5), (loss_b, ref_b)

    # 3) Forced small blocks: multi-step grid, core split, ragged last block and
    #    a duplicated/clamped block -> exercises the epilogue mask paths.
    xr = jax.random.normal(k5, (2, 3, 50, 64), dtype=jnp.float32)
    tr = (jax.random.uniform(k6, (2, 3, 50, 64)) > 0.5).astype(jnp.float32)
    loss_r = dice_loss(xr, tr, smooth=1.0, block_rows=64)
    jax.block_until_ready(loss_r)
    ref_r = _dice_loss_ref(xr, tr, smooth=1.0)
    assert jnp.allclose(loss_r, ref_r, rtol=1e-5, atol=1e-5), (loss_r, ref_r)

    # 4) numel not a multiple of 128: lane pad + in-kernel tail mask.
    xu = jax.random.normal(k7, (2, 4, 13, 17), dtype=jnp.float32)
    tu = (jax.random.uniform(k8, (2, 4, 13, 17)) > 0.5).astype(jnp.float32)
    loss_u = dice_loss(xu, tu, smooth=1.0)
    jax.block_until_ready(loss_u)
    ref_u = _dice_loss_ref(xu, tu, smooth=1.0)
    assert jnp.allclose(loss_u, ref_u, rtol=1e-5, atol=1e-5), (loss_u, ref_u)

    print("KERNEL_OK")
</pallas_src>

<mosaic_0001>
module attributes {stable_mosaic.version = 11 : i64} {
  func.func @_dice_kernel(%arg0: i32, %arg1: i32, %arg2: memref<1xi32, #tpu.memory_space<smem>>, %arg3: memref<16x128xf32, #tpu.memory_space<vmem>>, %arg4: memref<16x128xf32, #tpu.memory_space<vmem>>, %arg5: memref<1x2xf32, #tpu.memory_space<smem>>, %arg6: memref<8x128xf32, #tpu.memory_space<vmem>>, %arg7: memref<8x128xf32, #tpu.memory_space<vmem>>) attributes {dimension_semantics = [#tpu.dimension_semantics<parallel>, #tpu.dimension_semantics<arbitrary>], iteration_bounds = array<i64: 1, 1>, scalar_prefetch = 1 : i64, scratch_operands = 2 : i64, tpu.core_type = #tpu.core_type<tc>, window_params = [{transform_indices = @transform_0, window_bounds = array<i64: 16, 128>}, {transform_indices = @transform_1, window_bounds = array<i64: 16, 128>}, {transform_indices = @transform_2, window_bounds = array<i64: 1, 2>}]} {
    %c0_i32 = arith.constant 0 : i32
    %0 = arith.cmpi eq, %arg1, %c0_i32 : i32
    %1 = arith.extui %0 : i1 to i32
    %c0_i32_0 = arith.constant 0 : i32
    %2 = arith.cmpi ne, %1, %c0_i32_0 : i32
    scf.if %2 {
      %cst_10 = arith.constant 0.000000e+00 : f32
      %20 = vector.broadcast %cst_10 : f32 to vector<8x128xf32>
      %c0_11 = arith.constant 0 : index
      %c0_12 = arith.constant 0 : index
      %21 = vector.load %arg6[%c0_11, %c0_12] : memref<8x128xf32, #tpu.memory_space<vmem>>, vector<8x128xf32>
      tpu.vector_store %arg6[%c0_11, %c0_12], %20 {strides = array<i32>} : memref<8x128xf32, #tpu.memory_space<vmem>>, vector<8x128xf32>,
      %cst_13 = arith.constant 0.000000e+00 : f32
      %22 = vector.broadcast %cst_13 : f32 to vector<8x128xf32>
      %c0_14 = arith.constant 0 : index
      %c0_15 = arith.constant 0 : index
      %23 = vector.load %arg7[%c0_14, %c0_15] : memref<8x128xf32, #tpu.memory_space<vmem>>, vector<8x128xf32>
      tpu.vector_store %arg7[%c0_14, %c0_15], %22 {strides = array<i32>} : memref<8x128xf32, #tpu.memory_space<vmem>>, vector<8x128xf32>,
    } else {
    }
    %c0 = arith.constant 0 : index
    %c0_1 = arith.constant 0 : index
    %3 = vector.load %arg3[%c0, %c0_1] : memref<16x128xf32, #tpu.memory_space<vmem>>, vector<16x128xf32>
    %c0_2 = arith.constant 0 : index
    %c0_3 = arith.constant 0 : index
    %4 = vector.load %arg4[%c0_2, %c0_3] : memref<16x128xf32, #tpu.memory_space<vmem>>, vector<16x128xf32>
    %cst = arith.constant 5.000000e-01 : f32
    %5 = vector.broadcast %cst : f32 to vector<16x128xf32>
    %6 = arith.mulf %5, %3 : vector<16x128xf32>
    %7 = math.tanh %6 : vector<16x128xf32>
    %cst_4 = arith.constant 5.000000e-01 : f32
    %8 = vector.broadcast %cst_4 : f32 to vector<16x128xf32>
    %9 = arith.mulf %8, %7 : vector<16x128xf32>
    %cst_5 = arith.constant 5.000000e-01 : f32
    %10 = vector.broadcast %cst_5 : f32 to vector<16x128xf32>
    %11 = arith.addf %9, %10 : vector<16x128xf32>
    %12 = arith.mulf %11, %4 : vector<16x128xf32>
    %13 = arith.addf %11, %4 : vector<16x128xf32>
    %c0_i32_6 = arith.constant 0 : i32
    %14 = arith.cmpi slt, %arg1, %c0_i32_6 : i32
    %15 = arith.extui %14 : i1 to i32
    %c0_i32_7 = arith.constant 0 : i32
    %16 = arith.cmpi ne, %15, %c0_i32_7 : i32
    scf.if %16 {
      %c0_10 = arith.constant 0 : index
      %c0_11 = arith.constant 0 : index
      %20 = vector.load %arg6[%c0_10, %c0_11] : memref<8x128xf32, #tpu.memory_space<vmem>>, vector<8x128xf32>
      %21 = vector.shape_cast %12 : vector<16x128xf32> to vector<2x8x128xf32>
      %cst_12 = arith.constant dense<0.000000e+00> : vector<8x128xf32>
      %22 = vector.multi_reduction <add>, %21, %cst_12 [0] : vector<2x8x128xf32> to vector<8x128xf32>
      %23 = arith.addf %20, %22 : vector<8x128xf32>
      %c0_13 = arith.constant 0 : index
      %c0_14 = arith.constant 0 : index
      %24 = vector.load %arg6[%c0_13, %c0_14] : memref<8x128xf32, #tpu.memory_space<vmem>>, vector<8x128xf32>
      tpu.vector_store %arg6[%c0_13, %c0_14], %23 {strides = array<i32>} : memref<8x128xf32, #tpu.memory_space<vmem>>, vector<8x128xf32>,
      %c0_15 = arith.constant 0 : index
      %c0_16 = arith.constant 0 : index
      %25 = vector.load %arg7[%c0_15, %c0_16] : memref<8x128xf32, #tpu.memory_space<vmem>>, vector<8x128xf32>
      %26 = vector.shape_cast %13 : vector<16x128xf32> to vector<2x8x128xf32>
      %cst_17 = arith.constant dense<0.000000e+00> : vector<8x128xf32>
      %27 = vector.multi_reduction <add>, %26, %cst_17 [0] : vector<2x8x128xf32> to vector<8x128xf32>
      %28 = arith.addf %25, %27 : vector<8x128xf32>
      %c0_18 = arith.constant 0 : index
      %c0_19 = arith.constant 0 : index
      %29 = vector.load %arg7[%c0_18, %c0_19] : memref<8x128xf32, #tpu.memory_space<vmem>>, vector<8x128xf32>
      tpu.vector_store %arg7[%c0_18, %c0_19], %28 {strides = array<i32>} : memref<8x128xf32, #tpu.memory_space<vmem>>, vector<8x128xf32>,
    } else {
    }
    %c0_i32_8 = arith.constant 0 : i32
    %17 = arith.cmpi eq, %arg1, %c0_i32_8 : i32
    %18 = arith.extui %17 : i1 to i32
    %c0_i32_9 = arith.constant 0 : i32
    %19 = arith.cmpi ne, %18, %c0_i32_9 : i32
    scf.if %19 {
      %c1_i32 = arith.constant 1 : i32
      %20 = arith.muli %arg1, %c1_i32 : i32
      %21 = arith.addi %20, %arg0 : i32
      %c16_i32 = arith.constant 16 : i32
      %22 = arith.muli %21, %c16_i32 : i32
      %23 = tpu.iota {dimensions = array<i32: 0>} : vector<16x128xi32>
      %24 = tpu.iota {dimensions = array<i32: 1>} : vector<16x128xi32>
      %25 = vector.broadcast %22 : i32 to vector<16x128xi32>
      %26 = arith.addi %25, %23 : vector<16x128xi32>
      %c128_i32 = arith.constant 128 : i32
      %27 = vector.broadcast %c128_i32 : i32 to vector<16x128xi32>
      %28 = arith.muli %26, %27 : vector<16x128xi32>
      %29 = arith.addi %28, %24 : vector<16x128xi32>
      %c0_10 = arith.constant 0 : index
      %30 = memref.load %arg2[%c0_10] : memref<1xi32, #tpu.memory_space<smem>>
      %31 = vector.broadcast %30 : i32 to vector<16x128xi32>
      %32 = arith.cmpi slt, %29, %31 : vector<16x128xi32>
      %cst_11 = arith.constant 0.000000e+00 : f32
      %33 = vector.broadcast %cst_11 : f32 to vector<16x128xf32>
      %34 = arith.select %32, %12, %33 : vector<16x128xi1>, vector<16x128xf32>
      %cst_12 = arith.constant 0.000000e+00 : f32
      %35 = vector.broadcast %cst_12 : f32 to vector<16x128xf32>
      %36 = arith.select %32, %13, %35 : vector<16x128xi1>, vector<16x128xf32>
      %c0_13 = arith.constant 0 : index
      %c0_14 = arith.constant 0 : index
      %37 = vector.load %arg6[%c0_13, %c0_14] : memref<8x128xf32, #tpu.memory_space<vmem>>, vector<8x128xf32>
      %38 = vector.shape_cast %34 : vector<16x128xf32> to vector<2x8x128xf32>
      %cst_15 = arith.constant dense<0.000000e+00> : vector<8x128xf32>
      %39 = vector.multi_reduction <add>, %38, %cst_15 [0] : vector<2x8x128xf32> to vector<8x128xf32>
      %40 = arith.addf %37, %39 : vector<8x128xf32>
      %c0_16 = arith.constant 0 : index
      %c0_17 = arith.constant 0 : index
      %41 = vector.load %arg6[%c0_16, %c0_17] : memref<8x128xf32, #tpu.memory_space<vmem>>, vector<8x128xf32>
      tpu.vector_store %arg6[%c0_16, %c0_17], %40 {strides = array<i32>} : memref<8x128xf32, #tpu.memory_space<vmem>>, vector<8x128xf32>,
      %c0_18 = arith.constant 0 : index
      %c0_19 = arith.constant 0 : index
      %42 = vector.load %arg7[%c0_18, %c0_19] : memref<8x128xf32, #tpu.memory_space<vmem>>, vector<8x128xf32>
      %43 = vector.shape_cast %36 : vector<16x128xf32> to vector<2x8x128xf32>
      %cst_20 = arith.constant dense<0.000000e+00> : vector<8x128xf32>
      %44 = vector.multi_reduction <add>, %43, %cst_20 [0] : vector<2x8x128xf32> to vector<8x128xf32>
      %45 = arith.addf %42, %44 : vector<8x128xf32>
      %c0_21 = arith.constant 0 : index
      %c0_22 = arith.constant 0 : index
      %46 = vector.load %arg7[%c0_21, %c0_22] : memref<8x128xf32, #tpu.memory_space<vmem>>, vector<8x128xf32>
      tpu.vector_store %arg7[%c0_21, %c0_22], %45 {strides = array<i32>} : memref<8x128xf32, #tpu.memory_space<vmem>>, vector<8x128xf32>,
      %c0_23 = arith.constant 0 : index
      %c0_24 = arith.constant 0 : index
      %47 = vector.load %arg6[%c0_23, %c0_24] : memref<8x128xf32, #tpu.memory_space<vmem>>, vector<8x128xf32>
      %48 = vector.shape_cast %47 : vector<8x128xf32> to vector<1x8x128xf32>
      %cst_25 = arith.constant dense<0.000000e+00> : vector<1xf32>
      %49 = vector.multi_reduction <add>, %48, %cst_25 [1, 2] : vector<1x8x128xf32> to vector<1xf32>
      %50 = vector.shape_cast %49 : vector<1xf32> to vector<1x1x1xf32>
      %51 = vector.extract %50[0, 0, 0] : f32 from vector<1x1x1xf32>
      %c0_26 = arith.constant 0 : index
      %c0_27 = arith.constant 0 : index
      %52 = memref.load %arg5[%c0_26, %c0_27] : memref<1x2xf32, #tpu.memory_space<smem>>
      memref.store %51, %arg5[%c0_26, %c0_27] : memref<1x2xf32, #tpu.memory_space<smem>>
      %c0_28 = arith.constant 0 : index
      %c0_29 = arith.constant 0 : index
      %53 = vector.load %arg7[%c0_28, %c0_29] : memref<8x128xf32, #tpu.memory_space<vmem>>, vector<8x128xf32>
      %54 = vector.shape_cast %53 : vector<8x128xf32> to vector<1x8x128xf32>
      %cst_30 = arith.constant dense<0.000000e+00> : vector<1xf32>
      %55 = vector.multi_reduction <add>, %54, %cst_30 [1, 2] : vector<1x8x128xf32> to vector<1xf32>
      %56 = vector.shape_cast %55 : vector<1xf32> to vector<1x1x1xf32>
      %57 = vector.extract %56[0, 0, 0] : f32 from vector<1x1x1xf32>
      %c0_31 = arith.constant 0 : index
      %c1 = arith.constant 1 : index
      %58 = memref.load %arg5[%c0_31, %c1] : memref<1x2xf32, #tpu.memory_space<smem>>
      memref.store %57, %arg5[%c0_31, %c1] : memref<1x2xf32, #tpu.memory_space<smem>>
    } else {
    }
    return
  }
  func.func @transform_0(%arg0: i32, %arg1: i32, %arg2: memref<1xi32, #tpu.memory_space<smem>>) -> (i32, i32) {
    %c1_i32 = arith.constant 1 : i32
    %0 = arith.muli %arg1, %c1_i32 : i32
    %1 = arith.addi %0, %arg0 : i32
    %c0_i32 = arith.constant 0 : i32
    %2 = arith.minsi %1, %c0_i32 : i32
    %c0_i32_0 = arith.constant 0 : i32
    %c0_i32_1 = arith.constant 0 : i32
    return %2, %c0_i32_0 : i32, i32
  }
  func.func @transform_1(%arg0: i32, %arg1: i32, %arg2: memref<1xi32, #tpu.memory_space<smem>>) -> (i32, i32) {
    %c1_i32 = arith.constant 1 : i32
    %0 = arith.muli %arg1, %c1_i32 : i32
    %1 = arith.addi %0, %arg0 : i32
    %c0_i32 = arith.constant 0 : i32
    %2 = arith.minsi %1, %c0_i32 : i32
    %c0_i32_0 = arith.constant 0 : i32
    %c0_i32_1 = arith.constant 0 : i32
    return %2, %c0_i32_0 : i32, i32
  }
  func.func @transform_2(%arg0: i32, %arg1: i32, %arg2: memref<1xi32, #tpu.memory_space<smem>>) -> (i32, i32) {
    %c0_i32 = arith.constant 0 : i32
    %c0_i32_0 = arith.constant 0 : i32
    return %arg0, %c0_i32 : i32, i32
  }
}

</mosaic_0001>

<bundles_post_ra>
// kernel: tpu_custom_call.1
= control target key start
LH: loop header
LB: loop body
LE: loop exit
PB: predicated region body
PF: predicated region fallthrough
CT: control target
= control target key end

     0   :  { %9 = vsyncpa [#allocation7], 0  ;;  %s294_s0 = inlined_call_operand.<no memory space> [shape: s32[1], index: 0, kind: input, shape index: {}]   ;;  %s295_s1 = inlined_call_operand.hbm [shape: f32[16,128], index: 1, kind: input, shape index: {}]   ;;  %s296_s2 = inlined_call_operand.hbm [shape: f32[16,128], index: 2, kind: input, shape index: {}]   ;;  %s297_s3 = inlined_call_operand.hbm [shape: f32[1,2], index: 3, kind: output, shape index: {}]  }
   0x1   :  { %10 = vsyncpa [#allocation10], 0 }
   0x2   :  { %11 = vsyncpa [#allocation8], 0  ;;  %s22_s14 = sshll.u32 %s295_s1, 4  ;;  %s257_s15 = smov [#allocation6]   ;;  %s23_s14 = int_to_ptr.hbm [resolvable:$true] %s22_s14 }
   0x3   :  { %s24_s16 = sshll.u32 %s257_s15, 4  ;;  %s41_s19 = sshll.u32 %s296_s2, 4  ;;  %s25_s16 = int_to_ptr.vmem [resolvable:$true] %s24_s16  ;;  %s42_s19 = int_to_ptr.hbm [resolvable:$true] %s41_s19 }
   0x4   :  { %s258_s20 = smov 128   ;;  %s259_s21 = smov 8  }
   0x5   :  { %30 = dma.hbm_to_vmem [thread:$0]  %s23_s14, 256, %s25_s16, [#allocation7], %s258_s20, %s258_s20, %s259_s21  }
   0x6   :  { %s260_s22 = smov [#allocation9]  }
   0x7   :  { %s43_s23 = sshll.u32 %s260_s22, 4  ;;  %s44_s23 = int_to_ptr.vmem [resolvable:$true] %s43_s23 }
   0x8   :  { %49 = dma.hbm_to_vmem [thread:$0]  %s42_s19, 256, %s44_s23, [#allocation10], %s258_s20, %s258_s20, %s259_s21  }
   0x9   :  { %251 = dma.done.wait [#allocation7], 256  }
   0xa   :  { %252 = vsyncadd [#allocation7], 4294967040 }
   0xb   :  { %253 = dma.done.wait [#allocation10], 256  }
   0xc   :  { %254 = vsyncadd [#allocation10], 4294967040  ;;  %v105_v0 = vlaneseq  ;;  %v72_v2 = vld [vmem:[#allocation6] sm:$0xff]  ;;  %v73_v3 = vld [vmem:[#allocation6 + $0x8] sm:$0xff]  ;;  %v118_v15 = vstv %s294_s0  ;;  %s162_s26 = sshll.u32 %s297_s3, 4  ;;  %s261_s28 = smov [#allocation11]   ;;  %s163_s26 = int_to_ptr.hbm [resolvable:$true] %s162_s26 }
   0xd   :  { %v76_v4 = vmul.f32 0.5, %v72_v2  ;;  %v77_v5 = vmul.f32 0.5, %v73_v3  ;;  %v74_v16 = vld [vmem:[#allocation9] sm:$0xff]  ;;  %v75_v18 = vld [vmem:[#allocation9 + $0x8] sm:$0xff] }
   0xe   :  { %v106_v1 = vshrl.u32 %v105_v0, 7  ;;  %v109_v7 = vand.u32 127, %v105_v0 }
   0xf   :  { %187 = vtanh.f32 %v76_v4 }
  0x10   :  { %v107_v6 = vadd.s32 8, %v106_v1  ;;  %189 = vtanh.f32 %v77_v5  ;;  %v113_v8 = vmul.u32 128, %v106_v1 }
  0x12   :  { %v114_v9 = vmul.u32 128, %v107_v6  ;;  %v115_v11 = vadd.s32 %v113_v8, %v109_v7 }
  0x14   :  { %v116_v14 = vadd.s32 %v114_v9, %v109_v7  ;;  %vm119_vm0 = vcmp.lt.s32.totalorder %v115_v11, %v118_v15 }
  0x15   :  { %v188_v10 = vpop.eup %187 }
  0x16   :  { %v190_v12 = vpop.eup %189  ;;  %v80_v13 = vmul.f32 0.5, %v188_v10  ;;  %vm120_vm1 = vcmp.lt.s32.totalorder %v116_v14, %v118_v15 }
  0x17   :  { %v81_v17 = vmul.f32 0.5, %v190_v12 }
  0x18   :  { %v82_v19 = vadd.f32 0.5, %v80_v13 }
  0x19   :  { %v83_v20 = vadd.f32 0.5, %v81_v17 }
  0x1a   :  { %v84_v21 = vmul.f32 %v82_v19, %v74_v16  ;;  %v86_v25 = vadd.f32 %v82_v19, %v74_v16 }
  0x1b   :  { %v85_v22 = vmul.f32 %v83_v20, %v75_v18  ;;  %v87_v26 = vadd.f32 %v83_v20, %v75_v18 }
  0x1c   :  { %v121_v23 = vsel %vm119_vm0, %v84_v21, 0.0  ;;  %v123_v28 = vsel %vm119_vm0, %v86_v25, 0.0 }
  0x1d   :  { %v122_v24 = vsel %vm120_vm1, %v85_v22, 0.0  ;;  %v124_v29 = vsel %vm120_vm1, %v87_v26, 0.0 }
  0x1e   :  { %v126_v27 = vadd.f32 %v122_v24, %v121_v23  ;;  %v130_v30 = vadd.f32 %v124_v29, %v123_v28 }
  0x20   :  { %134 = vadd.xlane.f32.xlu0 %v126_v27 }
  0x28   :  { %146 = vadd.xlane.f32.xlu0 %v130_v30 }
  0x93   :  { %v135_v31 = vpop.xlane.xlu0 %134 }
  0x94   :  { %v136_v32 = vrot.slane %v135_v31, 4 }
  0x96   :  { %v137_v33 = vadd.f32 %v136_v32, %v135_v31 }
  0x98   :  { %v138_v34 = vrot.slane %v137_v33, 2 }
  0x9a   :  { %v139_v35 = vadd.f32 %v138_v34, %v137_v33 }
  0x9b   :  { %v147_v36 = vpop.xlane.xlu0 %146 }
  0x9c   :  { %v148_v37 = vrot.slane %v147_v36, 4  ;;  %v140_v38 = vrot.slane %v139_v35, 1 }
  0x9e   :  { %v149_v39 = vadd.f32 %v148_v37, %v147_v36  ;;  %v141_v40 = vadd.f32 %v140_v38, %v139_v35 }
  0xa0   :  { %v150_v41 = vrot.slane %v149_v39, 2  ;;  %178 = vpush %v141_v40 }
  0xa2   :  { %v151_v42 = vadd.f32 %v150_v41, %v149_v39 }
  0xa4   :  { %v152_v43 = vrot.slane %v151_v42, 1 }
  0xa6   :  { %v153_v44 = vadd.f32 %v152_v43, %v151_v42 }
  0xa8   :  { %180 = vpush %v153_v44 }
  0xd1   :  { %s179_s0 = spop %178 }
  0xd2   :  { %144 = sst [smem:[#allocation11]] %s179_s0 }
  0xd9   :  { %s181_s27 = spop %180 }
  0xda   :  { %156 = sst [smem:[#allocation11 + $0x1]] %s181_s27 }
  0xdb   :  { %165 = dma.smem_to_hbm %s261_s28, 16, %s163_s26, [#allocation8]  }
  0xdc   :  { %255 = dma.done.wait [#allocation8], 16  }
  0xdd   :  { %256 = vsyncadd [#allocation8], 4294967280 }
  0xde   :  { %170 = sfence }
  0xdf   :  { %171 = vsyncpa [#allocation7], 1 }
  0xe0   :  { %172 = vsyncpa [#allocation10], 1 }
  0xe1   :  { %173 = vsyncpa [#allocation8], 1 }

</bundles_post_ra>
